<compile_context>
chip_gen: v7x
topology: tpu7x:2x2x1
jax: 0.10.0
libtpu: 0.0.40
codegen_flags: <defaults>
</compile_context>

<pallas_src>
import functools

import jax
import jax.numpy as jnp
from jax.experimental import pallas as pl
from jax.experimental.pallas import tpu as pltpu


def _ce_acc_kernel(logits_ref, targets_ref, loss_ref, acc_ref, sums_ref,
                   *, n_total, row_tile):
    step = pl.program_id(0)
    nsteps = pl.num_programs(0)

    @pl.when(step == 0)
    def _():
        sums_ref[0] = 0.0   # running sum of per-row loss
        sums_ref[1] = 0.0   # running count of correct predictions

    logits = logits_ref[...].astype(jnp.float32)    # (TM, C)
    targets = targets_ref[...].astype(jnp.float32)  # (TM, C)
    tm, c = logits.shape

    # Row-validity mask for the (possibly partial) last tile.
    row_ids = step * row_tile + jax.lax.broadcasted_iota(jnp.int32, (tm, 1), 0)
    valid = row_ids < n_total                                        # (TM, 1)

    # ---- cross entropy with probability targets (stable log-softmax) ----
    row_max = jnp.max(logits, axis=1, keepdims=True)                 # (TM, 1)
    shifted = logits - row_max
    lse = jnp.log(jnp.sum(jnp.exp(shifted), axis=1, keepdims=True))  # (TM, 1)
    log_probs = shifted - lse
    per_row_loss = -jnp.sum(targets * log_probs, axis=1, keepdims=True)  # (TM, 1)
    loss_part = jnp.sum(jnp.where(valid, per_row_loss, 0.0))

    # ---- accuracy: first-occurrence argmax on both streams ----
    # Single iota shared by both argmaxes; logits argmax reuses row_max.
    col_idx = jax.lax.broadcasted_iota(jnp.int32, (tm, c), 1)
    pred_idx = jnp.min(jnp.where(logits == row_max, col_idx, jnp.int32(c)),
                       axis=1, keepdims=True)
    tgt_max = jnp.max(targets, axis=1, keepdims=True)
    tgt_idx = jnp.min(jnp.where(targets == tgt_max, col_idx, jnp.int32(c)),
                      axis=1, keepdims=True)
    correct_part = jnp.sum(jnp.where(valid & (pred_idx == tgt_idx), 1.0, 0.0))

    sums_ref[0] += loss_part
    sums_ref[1] += correct_part

    @pl.when(step == nsteps - 1)
    def _():
        inv_n = jnp.float32(1.0 / float(n_total))
        loss_ref[0, 0] = sums_ref[0] * inv_n
        acc_ref[0, 0] = 100.0 * sums_ref[1] * inv_n


def _choose_row_tile(n, c, itemsize, row_tile=None):
    """Pick a batch tile: ~2 MiB per input tile, multiple of 8 (or the full N)."""
    if row_tile is None:
        target_bytes = 2 * 1024 * 1024
        row_tile = int(max(8, (target_bytes // max(1, c * itemsize)) // 8 * 8))
    if row_tile >= n:
        return int(n)               # full dim is always a legal block size
    return int(max(8, (row_tile // 8) * 8))


def multi_class_classification_loss(targets, outputs, *, row_tile=None):
    """targets: [N, C] (one-hot / soft probs), outputs: [N, C] logits.

    Returns (loss, accuracy) as float32 scalars, matching the PyTorch module.
    Inputs may be f32 or bf16; compute is done in f32 per tile.
    """
    assert targets.shape == outputs.shape and outputs.ndim == 2
    n, c = outputs.shape
    itemsize = max(jnp.dtype(outputs.dtype).itemsize,
                   jnp.dtype(targets.dtype).itemsize)
    tm = _choose_row_tile(n, c, itemsize, row_tile)
    grid = (pl.cdiv(n, tm),)

    kernel = functools.partial(_ce_acc_kernel, n_total=n, row_tile=tm)

    loss, acc = pl.pallas_call(
        kernel,
        out_shape=(
            jax.ShapeDtypeStruct((1, 1), jnp.float32),
            jax.ShapeDtypeStruct((1, 1), jnp.float32),
        ),
        grid_spec=pltpu.PrefetchScalarGridSpec(
            num_scalar_prefetch=0,
            grid=grid,
            in_specs=[
                pl.BlockSpec((tm, c), lambda i: (i, 0)),
                pl.BlockSpec((tm, c), lambda i: (i, 0)),
            ],
            out_specs=(
                pl.BlockSpec(memory_space=pltpu.SMEM),
                pl.BlockSpec(memory_space=pltpu.SMEM),
            ),
            scratch_shapes=[pltpu.SMEM((2,), jnp.float32)],
        ),
        compiler_params=pltpu.CompilerParams(
            dimension_semantics=("arbitrary",)),
    )(outputs, targets)
    return loss[0, 0], acc[0, 0]


def _reference(targets, outputs):
    """Pure-JAX reference for sanity checking."""
    logits = outputs.astype(jnp.float32)
    tgt = targets.astype(jnp.float32)
    log_probs = jax.nn.log_softmax(logits, axis=1)
    loss = jnp.mean(-jnp.sum(tgt * log_probs, axis=1))
    acc = 100.0 * jnp.mean(
        (jnp.argmax(logits, axis=1) == jnp.argmax(tgt, axis=1)).astype(jnp.float32)
    )
    return loss, acc


if __name__ == "__main__":
    key = jax.random.PRNGKey(0)
    k1, k2, k3, k4 = jax.random.split(key, 4)

    # Case 1: batch=8, classes=32, single tile, f32 inputs.
    N1, C1 = 8, 32
    logits1 = jax.random.normal(k1, (N1, C1), dtype=jnp.float32)
    labels1 = jax.random.randint(k2, (N1,), 0, C1)
    targets1 = jax.nn.one_hot(labels1, C1, dtype=jnp.float32)
    loss1, acc1 = multi_class_classification_loss(targets1, logits1)
    jax.block_until_ready((loss1, acc1))
    rl1, ra1 = _reference(targets1, logits1)
    assert jnp.allclose(loss1, rl1, atol=1e-4, rtol=1e-5), (loss1, rl1)
    assert jnp.allclose(acc1, ra1, atol=1e-3, rtol=1e-5), (acc1, ra1)

    # Case 2: batch=20 with row_tile=8 (3 grid steps, masked partial last tile),
    # bf16 streams upcast per-tile inside the kernel.
    N2, C2 = 20, 32
    logits2 = jax.random.normal(k3, (N2, C2), dtype=jnp.float32).astype(jnp.bfloat16)
    labels2 = jax.random.randint(k4, (N2,), 0, C2)
    targets2 = jax.nn.one_hot(labels2, C2, dtype=jnp.bfloat16)
    loss2, acc2 = multi_class_classification_loss(targets2, logits2, row_tile=8)
    jax.block_until_ready((loss2, acc2))
    rl2, ra2 = _reference(targets2, logits2)
    assert jnp.allclose(loss2, rl2, atol=1e-3, rtol=1e-3), (loss2, rl2)
    assert jnp.allclose(acc2, ra2, atol=1e-3, rtol=1e-5), (acc2, ra2)

    print("KERNEL_OK")
</pallas_src>

<mosaic_0001>
module attributes {stable_mosaic.version = 11 : i64} {
  func.func @_ce_acc_kernel(%arg0: i32, %arg1: memref<8x32xf32, #tpu.memory_space<vmem>>, %arg2: memref<8x32xf32, #tpu.memory_space<vmem>>, %arg3: memref<1x1xf32, #tpu.memory_space<smem>>, %arg4: memref<1x1xf32, #tpu.memory_space<smem>>, %arg5: memref<2xf32, #tpu.memory_space<smem>>) attributes {dimension_semantics = [#tpu.dimension_semantics<arbitrary>], iteration_bounds = array<i64: 1>, scalar_prefetch = 0 : i64, scratch_operands = 1 : i64, tpu.core_type = #tpu.core_type<tc>, window_params = [{transform_indices = @transform_0, window_bounds = array<i64: 8, 32>}, {transform_indices = @transform_1, window_bounds = array<i64: 8, 32>}, {transform_indices = @transform_2, window_bounds = array<i64: 1, 1>}, {transform_indices = @transform_3, window_bounds = array<i64: 1, 1>}]} {
    %c0_i32 = arith.constant 0 : i32
    %0 = arith.cmpi eq, %arg0, %c0_i32 : i32
    %1 = arith.extui %0 : i1 to i32
    %c0_i32_0 = arith.constant 0 : i32
    %2 = arith.cmpi ne, %1, %c0_i32_0 : i32
    scf.if %2 {
      %cst_22 = arith.constant 0.000000e+00 : f32
      %c0_23 = arith.constant 0 : index
      %65 = memref.load %arg5[%c0_23] : memref<2xf32, #tpu.memory_space<smem>>
      memref.store %cst_22, %arg5[%c0_23] : memref<2xf32, #tpu.memory_space<smem>>
      %cst_24 = arith.constant 0.000000e+00 : f32
      %c1_25 = arith.constant 1 : index
      %66 = memref.load %arg5[%c1_25] : memref<2xf32, #tpu.memory_space<smem>>
      memref.store %cst_24, %arg5[%c1_25] : memref<2xf32, #tpu.memory_space<smem>>
    } else {
    }
    %c0 = arith.constant 0 : index
    %c0_1 = arith.constant 0 : index
    %3 = vector.load %arg1[%c0, %c0_1] : memref<8x32xf32, #tpu.memory_space<vmem>>, vector<8x32xf32>
    %c0_2 = arith.constant 0 : index
    %c0_3 = arith.constant 0 : index
    %4 = vector.load %arg2[%c0_2, %c0_3] : memref<8x32xf32, #tpu.memory_space<vmem>>, vector<8x32xf32>
    %c8_i32 = arith.constant 8 : i32
    %5 = arith.muli %arg0, %c8_i32 : i32
    %6 = tpu.iota {dimensions = array<i32: 0>} : vector<8x1xi32>
    %7 = vector.broadcast %5 : i32 to vector<8x1xi32>
    %8 = arith.addi %7, %6 : vector<8x1xi32>
    %c8_i32_4 = arith.constant 8 : i32
    %9 = vector.broadcast %c8_i32_4 : i32 to vector<8x1xi32>
    %10 = arith.cmpi slt, %8, %9 : vector<8x1xi32>
    %cst = arith.constant dense<0xFF800000> : vector<8xf32>
    %11 = vector.multi_reduction <maximumf>, %3, %cst [1] : vector<8x32xf32> to vector<8xf32>
    %12 = vector.shape_cast %11 : vector<8xf32> to vector<8x1xf32>
    %13 = vector.broadcast %12 : vector<8x1xf32> to vector<8x32xf32>
    %14 = arith.subf %3, %13 : vector<8x32xf32>
    %15 = math.exp %14 : vector<8x32xf32>
    %cst_5 = arith.constant dense<0.000000e+00> : vector<8xf32>
    %16 = vector.multi_reduction <add>, %15, %cst_5 [1] : vector<8x32xf32> to vector<8xf32>
    %17 = vector.shape_cast %16 : vector<8xf32> to vector<8x1xf32>
    %18 = math.log %17 : vector<8x1xf32>
    %19 = vector.broadcast %18 : vector<8x1xf32> to vector<8x32xf32>
    %20 = arith.subf %14, %19 : vector<8x32xf32>
    %21 = arith.mulf %4, %20 : vector<8x32xf32>
    %cst_6 = arith.constant dense<0.000000e+00> : vector<8xf32>
    %22 = vector.multi_reduction <add>, %21, %cst_6 [1] : vector<8x32xf32> to vector<8xf32>
    %23 = vector.shape_cast %22 : vector<8xf32> to vector<8x1xf32>
    %cst_7 = arith.constant 0.000000e+00 : f32
    %24 = vector.broadcast %cst_7 : f32 to vector<8x1xf32>
    %25 = arith.subf %24, %23 : vector<8x1xf32>
    %cst_8 = arith.constant 0.000000e+00 : f32
    %26 = vector.broadcast %cst_8 : f32 to vector<8x1xf32>
    %27 = arith.select %10, %25, %26 : vector<8x1xi1>, vector<8x1xf32>
    %28 = vector.shape_cast %27 : vector<8x1xf32> to vector<1x8x1xf32>
    %cst_9 = arith.constant dense<0.000000e+00> : vector<1xf32>
    %29 = vector.multi_reduction <add>, %28, %cst_9 [1, 2] : vector<1x8x1xf32> to vector<1xf32>
    %30 = vector.shape_cast %29 : vector<1xf32> to vector<1x1x1xf32>
    %31 = vector.extract %30[0, 0, 0] : f32 from vector<1x1x1xf32>
    %32 = tpu.iota {dimensions = array<i32: 1>} : vector<8x32xi32>
    %33 = vector.broadcast %12 : vector<8x1xf32> to vector<8x32xf32>
    %34 = arith.cmpf oeq, %3, %33 : vector<8x32xf32>
    %c32_i32 = arith.constant 32 : i32
    %35 = vector.broadcast %c32_i32 : i32 to vector<8x32xi32>
    %36 = arith.select %34, %32, %35 : vector<8x32xi1>, vector<8x32xi32>
    %cst_10 = arith.constant dense<2147483647> : vector<8xi32>
    %37 = vector.multi_reduction <minsi>, %36, %cst_10 [1] : vector<8x32xi32> to vector<8xi32>
    %38 = vector.shape_cast %37 : vector<8xi32> to vector<8x1xi32>
    %cst_11 = arith.constant dense<0xFF800000> : vector<8xf32>
    %39 = vector.multi_reduction <maximumf>, %4, %cst_11 [1] : vector<8x32xf32> to vector<8xf32>
    %40 = vector.shape_cast %39 : vector<8xf32> to vector<8x1xf32>
    %41 = vector.broadcast %40 : vector<8x1xf32> to vector<8x32xf32>
    %42 = arith.cmpf oeq, %4, %41 : vector<8x32xf32>
    %c32_i32_12 = arith.constant 32 : i32
    %43 = vector.broadcast %c32_i32_12 : i32 to vector<8x32xi32>
    %44 = arith.select %42, %32, %43 : vector<8x32xi1>, vector<8x32xi32>
    %cst_13 = arith.constant dense<2147483647> : vector<8xi32>
    %45 = vector.multi_reduction <minsi>, %44, %cst_13 [1] : vector<8x32xi32> to vector<8xi32>
    %46 = vector.shape_cast %45 : vector<8xi32> to vector<8x1xi32>
    %47 = arith.cmpi eq, %38, %46 : vector<8x1xi32>
    %48 = arith.andi %10, %47 : vector<8x1xi1>
    %cst_14 = arith.constant 1.000000e+00 : f32
    %cst_15 = arith.constant 0.000000e+00 : f32
    %49 = vector.broadcast %cst_14 : f32 to vector<8x1xf32>
    %50 = vector.broadcast %cst_15 : f32 to vector<8x1xf32>
    %51 = arith.select %48, %49, %50 : vector<8x1xi1>, vector<8x1xf32>
    %52 = vector.shape_cast %51 : vector<8x1xf32> to vector<1x8x1xf32>
    %cst_16 = arith.constant dense<0.000000e+00> : vector<1xf32>
    %53 = vector.multi_reduction <add>, %52, %cst_16 [1, 2] : vector<1x8x1xf32> to vector<1xf32>
    %54 = vector.shape_cast %53 : vector<1xf32> to vector<1x1x1xf32>
    %55 = vector.extract %54[0, 0, 0] : f32 from vector<1x1x1xf32>
    %c0_17 = arith.constant 0 : index
    %56 = memref.load %arg5[%c0_17] : memref<2xf32, #tpu.memory_space<smem>>
    %57 = arith.addf %56, %31 : f32
    %c0_18 = arith.constant 0 : index
    %58 = memref.load %arg5[%c0_18] : memref<2xf32, #tpu.memory_space<smem>>
    memref.store %57, %arg5[%c0_18] : memref<2xf32, #tpu.memory_space<smem>>
    %c1 = arith.constant 1 : index
    %59 = memref.load %arg5[%c1] : memref<2xf32, #tpu.memory_space<smem>>
    %60 = arith.addf %59, %55 : f32
    %c1_19 = arith.constant 1 : index
    %61 = memref.load %arg5[%c1_19] : memref<2xf32, #tpu.memory_space<smem>>
    memref.store %60, %arg5[%c1_19] : memref<2xf32, #tpu.memory_space<smem>>
    %c0_i32_20 = arith.constant 0 : i32
    %62 = arith.cmpi eq, %arg0, %c0_i32_20 : i32
    %63 = arith.extui %62 : i1 to i32
    %c0_i32_21 = arith.constant 0 : i32
    %64 = arith.cmpi ne, %63, %c0_i32_21 : i32
    scf.if %64 {
      %c0_22 = arith.constant 0 : index
      %65 = memref.load %arg5[%c0_22] : memref<2xf32, #tpu.memory_space<smem>>
      %cst_23 = arith.constant 1.250000e-01 : f32
      %66 = arith.mulf %65, %cst_23 : f32
      %c0_24 = arith.constant 0 : index
      %c0_25 = arith.constant 0 : index
      %67 = memref.load %arg3[%c0_24, %c0_25] : memref<1x1xf32, #tpu.memory_space<smem>>
      memref.store %66, %arg3[%c0_24, %c0_25] : memref<1x1xf32, #tpu.memory_space<smem>>
      %c1_26 = arith.constant 1 : index
      %68 = memref.load %arg5[%c1_26] : memref<2xf32, #tpu.memory_space<smem>>
      %cst_27 = arith.constant 1.000000e+02 : f32
      %69 = arith.mulf %cst_27, %68 : f32
      %cst_28 = arith.constant 1.250000e-01 : f32
      %70 = arith.mulf %69, %cst_28 : f32
      %c0_29 = arith.constant 0 : index
      %c0_30 = arith.constant 0 : index
      %71 = memref.load %arg4[%c0_29, %c0_30] : memref<1x1xf32, #tpu.memory_space<smem>>
      memref.store %70, %arg4[%c0_29, %c0_30] : memref<1x1xf32, #tpu.memory_space<smem>>
    } else {
    }
    return
  }
  func.func @transform_0(%arg0: i32) -> (i32, i32) {
    %c0_i32 = arith.constant 0 : i32
    %c0_i32_0 = arith.constant 0 : i32
    return %arg0, %c0_i32 : i32, i32
  }
  func.func @transform_1(%arg0: i32) -> (i32, i32) {
    %c0_i32 = arith.constant 0 : i32
    %c0_i32_0 = arith.constant 0 : i32
    return %arg0, %c0_i32 : i32, i32
  }
  func.func @transform_2(%arg0: i32) -> (i32, i32) {
    %c0_i32 = arith.constant 0 : i32
    %c0_i32_0 = arith.constant 0 : i32
    %c0_i32_1 = arith.constant 0 : i32
    return %c0_i32, %c0_i32_0 : i32, i32
  }
  func.func @transform_3(%arg0: i32) -> (i32, i32) {
    %c0_i32 = arith.constant 0 : i32
    %c0_i32_0 = arith.constant 0 : i32
    %c0_i32_1 = arith.constant 0 : i32
    return %c0_i32, %c0_i32_0 : i32, i32
  }
}

</mosaic_0001>

<bundles_post_ra>
// kernel: tpu_custom_call.1
= control target key start
LH: loop header
LB: loop body
LE: loop exit
PB: predicated region body
PF: predicated region fallthrough
CT: control target
= control target key end

     0   :  { %9 = vsyncpa [#allocation4], 0  ;;  %s350_s0 = inlined_call_operand.hbm [shape: f32[8,32], index: 0, kind: input, shape index: {}]   ;;  %s351_s1 = inlined_call_operand.hbm [shape: f32[8,32], index: 1, kind: input, shape index: {}]   ;;  %s352_s2 = inlined_call_operand.hbm [shape: f32[1,1], index: 2, kind: output, shape index: {0}]   ;;  %s353_s3 = inlined_call_operand.hbm [shape: f32[1,1], index: 3, kind: output, shape index: {1}]  }
   0x1   :  { %10 = vsyncpa [#allocation7], 0 }
   0x2   :  { %11 = vsyncpa [#allocation5], 0 }
   0x3   :  { %12 = vsyncpa [#allocation10], 0  ;;  %s271_s12 = smov [#allocation3]   ;;  %s272_s14 = smov [#allocation6]  }
   0x4   :  { %s19_s13 = sshll.u32 %s271_s12, 4  ;;  %s29_s15 = sshll.u32 %s272_s14, 4  ;;  %s20_s13 = int_to_ptr.vmem [resolvable:$true] %s19_s13  ;;  %s30_s15 = int_to_ptr.vmem [resolvable:$true] %s29_s15 }
   0x5   :  { %s199_s18 = scalar_lea.hbm %s350_s0, 128 }
   0x6   :  { %p200_p0 = scmp.ne.s32.totalorder %s350_s0, %s199_s18  ;;  %p203_p1 = scmp.lt.u32.totalorder %s199_s18, %s350_s0 }
   0x8   :  { %p205_p2 = pnand %p203_p1, %p200_p0 }
   0xa   :  { %208 = shalt.err (!%p205_p2)
}
   0xb   :  { %s209_s23 = scalar_lea.vmem %s20_s13, 128  ;;  %p214_p4 = scmp.lt.s32.totalorder %s20_s13, %s20_s13 }
   0xc   :  { %p210_p3 = scmp.ne.s32.totalorder %s20_s13, %s209_s23  ;;  %p215_p5 = scmp.lt.s32.totalorder %s209_s23, %s209_s23 }
   0xe   :  { %p216_p6 = por %p215_p5, %p214_p4 }
  0x10   :  { %p217_p7 = pnand %p216_p6, %p210_p3 }
  0x12   :  { %220 = shalt.err (!%p217_p7)
}
  0x13   :  { %22 = dma.hbm_to_vmem [thread:$0]  %s350_s0, 128, %s20_s13, [#allocation4]  }
  0x14   :  { %s221_s28 = scalar_lea.hbm %s351_s1, 128 }
  0x15   :  { %p222_p8 = scmp.ne.s32.totalorder %s351_s1, %s221_s28  ;;  %p225_p9 = scmp.lt.u32.totalorder %s221_s28, %s351_s1 }
  0x17   :  { %p227_p10 = pnand %p225_p9, %p222_p8 }
  0x19   :  { %230 = shalt.err (!%p227_p10)
}
  0x1a   :  { %s231_s6 = scalar_lea.vmem %s30_s15, 128  ;;  %p236_p12 = scmp.lt.s32.totalorder %s30_s15, %s30_s15 }
  0x1b   :  { %p232_p11 = scmp.ne.s32.totalorder %s30_s15, %s231_s6  ;;  %p237_p13 = scmp.lt.s32.totalorder %s231_s6, %s231_s6 }
  0x1d   :  { %p238_p0 = por %p237_p13, %p236_p12 }
  0x1f   :  { %p239_p1 = pnand %p238_p0, %p232_p11 }
  0x21   :  { %242 = shalt.err (!%p239_p1)
}
  0x22   :  { %32 = dma.hbm_to_vmem [thread:$0]  %s351_s1, 128, %s30_s15, [#allocation7]  }
  0x23   :  { %263 = dma.done.wait [#allocation4], 128  }
  0x24   :  { %264 = vsyncadd [#allocation4], 4294967168 }
  0x25   :  { %265 = dma.done.wait [#allocation7], 128  }
  0x26   :  { %266 = vsyncadd [#allocation7], 4294967168  ;;  %vm55_vm0 = vcmask 261120   ;;  %v47_v0 = vld [vmem:[#allocation3] sm:$0xff]  ;;  %v48_v1 = vld [vmem:[#allocation6] sm:$0xff]  ;;  %v85_v4 = vlaneseq  ;;  %vm74_vm5 = vcmask 7168  }
  0x27   :  { %v56_v2 = vsel %vm55_vm0, %v47_v0, -inf  ;;  %v104_v3 = vsel %vm55_vm0, %v48_v1, -inf  ;;  %v273_v44 = vmov 0.0   ;;  %s243_s14 = scalar_lea.hbm %s352_s2, 16 }
  0x28   :  { %57 = vmax.xlane.f32.xlu0 %v56_v2  ;;  %v86_v8 = vand.u32 127, %v85_v4  ;;  %p244_p2 = scmp.ne.s32.totalorder %s352_s2, %s243_s14  ;;  %p247_p3 = scmp.lt.u32.totalorder %s243_s14, %s352_s2 }
  0x2a   :  { %p249_p4 = pnand %p247_p3, %p244_p2 }
  0x2c   :  { %105 = vmax.xlane.f32.xlu0 %v104_v3 }
  0xb5   :  { %v58_v5 = vpop.xlane.xlu0 %57 }
  0xb6   :  { %v59_v6 = vsub.f32 %v47_v0, %v58_v5  ;;  %vm87_vm2 = vcmp.eq.f32.partialorder %v47_v0, %v58_v5 }
  0xb7   :  { %v88_v13 = vsel %vm87_vm2, %v86_v8, 32 }
  0xb8   :  { %v60_v7 = vmul.f32 1.442695, %v59_v6  ;;  %v89_v15 = vsel %vm55_vm0, %v88_v13, 2147483647 }
  0xb9   :  { %v106_v9 = vpop.xlane.xlu0 %105  ;;  %v91_v17 = vshra.s32 %v89_v15, 16  ;;  %v90_v25 = vand.u32 65535, %v89_v15 }
  0xba   :  { %195 = vpow2.f32 %v60_v7  ;;  %vm107_vm1 = vcmp.eq.f32.partialorder %v48_v1, %v106_v9 }
  0xbb   :  { %v108_v10 = vsel %vm107_vm1, %v86_v8, 32  ;;  %v93_v19 = vcvt.s32.f32 %v91_v17  ;;  %v92_v27 = vcvt.s32.f32 %v90_v25 }
  0xbc   :  { %v109_v11 = vsel %vm55_vm0, %v108_v10, 2147483647 }
  0xbd   :  { %v111_v12 = vshra.s32 %v109_v11, 16  ;;  %v110_v20 = vand.u32 65535, %v109_v11 }
  0xbf   :  { %v113_v14 = vcvt.s32.f32 %v111_v12  ;;  %v112_v22 = vcvt.s32.f32 %v110_v20 }
  0xc1   :  { %114 = vmin.xlane.f32.xlu0 %v113_v14 }
  0xc4   :  { %v196_v16 = vpop.eup %195 }
  0xc5   :  { %v62_v18 = vsel %vm55_vm0, %v196_v16, 0.0 }
  0xc6   :  { %63 = vadd.xlane.f32.xlu1 %v62_v18 }
  0xca   :  { %94 = vmin.xlane.f32.xlu1 %v93_v19 }
 0x14e   :  { %v115_v21 = vpop.xlane.xlu0 %114 }
 0x14f   :  { %vm116_vm3 = vcmp.eq.f32.partialorder %v113_v14, %v115_v21  ;;  %v121_v35 = vcvt.f32.s32 %v115_v21 }
 0x150   :  { %v117_v23 = vsel %vm116_vm3, %v112_v22, inf }
 0x151   :  { %118 = vmin.xlane.f32.xlu0 %v117_v23  ;;  %v122_v39 = vshll.u32 %v121_v35, 16 }
 0x153   :  { %v64_v24 = vpop.xlane.xlu1 %63 }
 0x154   :  { %197 = vlog2.f32 %v64_v24 }
 0x157   :  { %v95_v26 = vpop.xlane.xlu1 %94 }
 0x158   :  { %vm96_vm4 = vcmp.eq.f32.partialorder %v93_v19, %v95_v26  ;;  %v101_v36 = vcvt.f32.s32 %v95_v26 }
 0x159   :  { %v97_v28 = vsel %vm96_vm4, %v92_v27, inf }
 0x15a   :  { %98 = vmin.xlane.f32.xlu1 %v97_v28  ;;  %v102_v40 = vshll.u32 %v101_v36, 16 }
 0x15e   :  { %v198_v29 = vpop.eup %197 }
 0x15f   :  { %v66_v30 = vmul.f32 0.6931472, %v198_v29 }
 0x161   :  { %v67_v31 = vsub.f32 %v59_v6, %v66_v30 }
 0x163   :  { %v68_v32 = vmul.f32 %v67_v31, %v48_v1 }
 0x165   :  { %v69_v33 = vsel %vm55_vm0, %v68_v32, 0.0 }
 0x166   :  { %70 = vadd.xlane.f32.xlu1 %v69_v33 }
 0x1de   :  { %v119_v34 = vpop.xlane.xlu0 %118 }
 0x1df   :  { %v120_v37 = vcvt.f32.s32 %v119_v34 }
 0x1e1   :  { %v123_v42 = vadd.s32 %v122_v39, %v120_v37 }
 0x1e7   :  { %v99_v38 = vpop.xlane.xlu1 %98 }
 0x1e8   :  { %v100_v41 = vcvt.f32.s32 %v99_v38 }
 0x1ea   :  { %v103_v43 = vadd.s32 %v102_v40, %v100_v41 }
 0x1ec   :  { %vm124_vm6 = vcmp.eq.s32.totalorder %v103_v43, %v123_v42 }
 0x1ed   :  { %v126_v45 = vsel %vm124_vm6, 1.0, %v273_v44 }
 0x1ee   :  { %v127_v46 = vsel %vm74_vm5, %v126_v45, 0.0 }
 0x1ef   :  { %128 = vadd.xlane.f32.xlu1 %v127_v46 }
 0x1f3   :  { %v71_v47 = vpop.xlane.xlu1 %70 }
 0x1f4   :  { %v72_v48 = vsub.f32 0.0, %v71_v47 }
 0x1f6   :  { %v75_v49 = vsel %vm74_vm5, %v72_v48, 0.0 }
 0x1f7   :  { %76 = vadd.xlane.f32.xlu0 %v75_v49 }
 0x27c   :  { %v129_v50 = vpop.xlane.xlu1 %128 }
 0x27d   :  { %v130_v51 = vrot.slane %v129_v50, 4 }
 0x27f   :  { %v131_v52 = vadd.f32 %v130_v51, %v129_v50 }
 0x281   :  { %v132_v53 = vrot.slane %v131_v52, 2 }
 0x283   :  { %v133_v57 = vadd.f32 %v132_v53, %v131_v52 }
 0x284   :  { %v77_v54 = vpop.xlane.xlu0 %76 }
 0x285   :  { %v78_v55 = vrot.slane %v77_v54, 4  ;;  %v134_v60 = vrot.slane %v133_v57, 1 }
 0x287   :  { %v79_v56 = vadd.f32 %v78_v55, %v77_v54  ;;  %v135_v63 = vadd.f32 %v134_v60, %v133_v57 }
 0x289   :  { %v80_v58 = vrot.slane %v79_v56, 2 }
 0x28b   :  { %v81_v59 = vadd.f32 %v80_v58, %v79_v56 }
 0x28d   :  { %v82_v61 = vrot.slane %v81_v59, 1 }
 0x28f   :  { %v83_v62 = vadd.f32 %v82_v61, %v81_v59 }
 0x291   :  { %186 = vpush %v83_v62 }
 0x292   :  { %188 = vpush %v135_v63 }
 0x2c2   :  { %s187_s1 = spop %186 }
 0x2c3   :  { %s149_s8 = smul.f32 0.125, %s187_s1  ;;  %s189_s9 = spop %188 }
 0x2c4   :  { %s153_s10 = smul.f32 100.0, %s189_s9 }
 0x2c5   :  { %151 = sst [smem:[#allocation8]] %s149_s8 }
 0x2c6   :  { %s154_s11 = smul.f32 0.125, %s153_s10 }
 0x2c7   :  { %252 = shalt.err (!%p249_p4)
}
 0x2c8   :  { %s274_s19 = smov [#allocation8]   ;;  %156 = sst [smem:[#allocation9]] %s154_s11 }
 0x2c9   :  { %164 = dma.smem_to_hbm %s274_s19, 16, %s352_s2, [#allocation5]  }
 0x2ca   :  { %s253_s24 = scalar_lea.hbm %s353_s3, 16 }
 0x2cb   :  { %p254_p5 = scmp.ne.s32.totalorder %s353_s3, %s253_s24  ;;  %p257_p6 = scmp.lt.u32.totalorder %s253_s24, %s353_s3 }
 0x2cd   :  { %p259_p7 = pnand %p257_p6, %p254_p5 }
 0x2cf   :  { %262 = shalt.err (!%p259_p7)
}
 0x2d0   :  { %s275_s29 = smov [#allocation9]  }
 0x2d1   :  { %172 = dma.smem_to_hbm %s275_s29, 16, %s353_s3, [#allocation10]  }
 0x2d2   :  { %267 = dma.done.wait [#allocation5], 16  }
 0x2d3   :  { %268 = vsyncadd [#allocation5], 4294967280 }
 0x2d4   :  { %269 = dma.done.wait [#allocation10], 16  }
 0x2d5   :  { %270 = vsyncadd [#allocation10], 4294967280 }
 0x2d6   :  { %179 = sfence }
 0x2d7   :  { %180 = vsyncpa [#allocation4], 1 }
 0x2d8   :  { %181 = vsyncpa [#allocation7], 1 }
 0x2d9   :  { %182 = vsyncpa [#allocation5], 1 }
 0x2da   :  { %183 = vsyncpa [#allocation10], 1 }

</bundles_post_ra>
